<compile_context>
chip_gen: v7x
topology: tpu7x:2x2x1
jax: 0.10.0
libtpu: 0.0.40
codegen_flags: <defaults>
</compile_context>

<pallas_src>
import jax
import jax.numpy as jnp
import numpy as np
from jax.experimental import pallas as pl
from jax.experimental.pallas import tpu as pltpu


def _round_up(x, m):
    return ((x + m - 1) // m) * m


def posteriori_kernel(cond_ref, w1_ref, b1_ref, w2_ref, b2_ref, w3_ref, b3_ref,
                      out_ref):
    f32 = jnp.float32

    # Layer 1: cond @ W1 + b1 -> LeakyReLU(0.2)   (single MXU pass, K=128)
    h1 = jnp.dot(cond_ref[...], w1_ref[...], preferred_element_type=f32)
    h1 = h1 + b1_ref[...]
    h1 = jnp.where(h1 > 0, h1, 0.2 * h1)

    # Layer 2: h1 @ W2 + b2 -> LeakyReLU(0.2)     (N padded to 128, lane-dense)
    h2 = jnp.dot(h1, w2_ref[...], preferred_element_type=f32)
    h2 = h2 + b2_ref[...]
    h2 = jnp.where(h2 > 0, h2, 0.2 * h2)

    # Layer 3: h2 @ W3 + b3  (no activation)
    out_ref[...] = jnp.dot(h2, w3_ref[...], preferred_element_type=f32) + b3_ref[...]


def posteriori_generator(sen_state, key_state, labels1, labels2, eps, params):
    """Pallas-backed forward. eps is the Gaussian noise (wrapper-generated)."""
    f32 = jnp.float32
    batch = key_state.shape[0]
    latent = params["w3"].shape[1]
    hidden = params["w1"].shape[1]
    cond_dim = params["w1"].shape[0]

    # --- glue: embedding gather + cond concat (tiny tables, free in XLA) ---
    factor1 = jnp.take(params["emb1"], labels1, axis=0)
    factor2 = jnp.take(params["emb2"], labels2, axis=0)
    cond = jnp.concatenate(
        [sen_state, key_state, factor1, factor2, eps], axis=1).astype(f32)

    # --- lane / batch padding so every tile is (8k, 128m) and stores are dense
    cond_pad = _round_up(cond_dim, 128)       # 96  -> 128
    lat_pad = _round_up(latent, 128)          # 32  -> 128
    tile_b = min(256, _round_up(batch, 8))    # multiple of 8 sublanes
    b_pad = _round_up(batch, tile_b)

    cond_p = jnp.pad(cond, ((0, b_pad - batch), (0, cond_pad - cond_dim)))
    w1_p = jnp.pad(params["w1"].astype(f32), ((0, cond_pad - cond_dim), (0, 0)))
    b1_p = params["b1"].astype(f32).reshape(1, hidden)
    w2_p = jnp.pad(params["w2"].astype(f32), ((0, 0), (0, lat_pad - latent)))
    b2_p = jnp.pad(params["b2"].astype(f32).reshape(1, latent),
                   ((0, 0), (0, lat_pad - latent)))
    w3_p = jnp.pad(params["w3"].astype(f32),
                   ((0, lat_pad - latent), (0, lat_pad - latent)))
    b3_p = jnp.pad(params["b3"].astype(f32).reshape(1, latent),
                   ((0, 0), (0, lat_pad - latent)))

    grid = (b_pad // tile_b,)

    out_padded = pl.pallas_call(
        posteriori_kernel,
        out_shape=jax.ShapeDtypeStruct((b_pad, lat_pad), f32),
        grid=grid,
        in_specs=[
            pl.BlockSpec((tile_b, cond_pad), lambda i: (i, 0)),   # cond tile
            pl.BlockSpec((cond_pad, hidden), lambda i: (0, 0)),   # W1 (resident)
            pl.BlockSpec((1, hidden), lambda i: (0, 0)),          # b1
            pl.BlockSpec((hidden, lat_pad), lambda i: (0, 0)),    # W2
            pl.BlockSpec((1, lat_pad), lambda i: (0, 0)),         # b2
            pl.BlockSpec((lat_pad, lat_pad), lambda i: (0, 0)),   # W3
            pl.BlockSpec((1, lat_pad), lambda i: (0, 0)),         # b3
        ],
        out_specs=pl.BlockSpec((tile_b, lat_pad), lambda i: (i, 0)),
        compiler_params=pltpu.CompilerParams(
            dimension_semantics=("parallel",)),
    )(cond_p, w1_p, b1_p, w2_p, b2_p, w3_p, b3_p)

    return out_padded[:batch, :latent]


def posteriori_reference(sen_state, key_state, labels1, labels2, eps, params):
    """Plain-JAX reference mirroring the PyTorch forward."""
    factor1 = params["emb1"][labels1]
    factor2 = params["emb2"][labels2]
    cond = jnp.concatenate([sen_state, key_state, factor1, factor2, eps], axis=1)
    h = cond @ params["w1"] + params["b1"]
    h = jnp.where(h > 0, h, 0.2 * h)
    h = h @ params["w2"] + params["b2"]
    h = jnp.where(h > 0, h, 0.2 * h)
    return h @ params["w3"] + params["b3"]


if __name__ == "__main__":
    # Small shapes consistent with the module.
    batch = 8
    sen_dim, key_dim = 24, 8          # inp_size = sen_dim + key_dim = 32
    inp_size = sen_dim + key_dim
    latent_size = 32
    n_class1, n_class2 = 3, 5
    factor_emb_size = 16
    hidden = 512
    cond_dim = inp_size + 2 * factor_emb_size + latent_size  # 96

    root = jax.random.PRNGKey(0)
    keys = jax.random.split(root, 12)

    # Deterministic synthetic parameters (shapes from __init__).
    params = {
        "emb1": 0.1 * jax.random.normal(keys[0], (n_class1, factor_emb_size), jnp.float32),
        "emb2": 0.1 * jax.random.normal(keys[1], (n_class2, factor_emb_size), jnp.float32),
        "w1": (1.0 / np.sqrt(cond_dim)) * jax.random.normal(keys[2], (cond_dim, hidden), jnp.float32),
        "b1": 0.01 * jax.random.normal(keys[3], (hidden,), jnp.float32),
        "w2": (1.0 / np.sqrt(hidden)) * jax.random.normal(keys[4], (hidden, latent_size), jnp.float32),
        "b2": 0.01 * jax.random.normal(keys[5], (latent_size,), jnp.float32),
        "w3": (1.0 / np.sqrt(latent_size)) * jax.random.normal(keys[6], (latent_size, latent_size), jnp.float32),
        "b3": 0.01 * jax.random.normal(keys[7], (latent_size,), jnp.float32),
    }

    # Deterministic example inputs.
    sen_state = jax.random.normal(keys[8], (batch, sen_dim), jnp.float32)
    key_state = jax.random.normal(keys[9], (batch, key_dim), jnp.float32)
    labels1 = jax.random.randint(keys[10], (batch,), 0, n_class1, dtype=jnp.int32)
    labels2 = jax.random.randint(keys[11], (batch,), 0, n_class2, dtype=jnp.int32)
    # torch.randn equivalent, shared with the reference so results compare exactly.
    eps = jax.random.normal(jax.random.PRNGKey(42), (batch, latent_size), jnp.float32)

    z_post = posteriori_generator(sen_state, key_state, labels1, labels2, eps, params)
    z_post = jax.block_until_ready(z_post)

    z_ref = posteriori_reference(sen_state, key_state, labels1, labels2, eps, params)
    np.testing.assert_allclose(np.asarray(z_post), np.asarray(z_ref), rtol=1e-5, atol=1e-5)

    print("KERNEL_OK")
</pallas_src>

<mosaic_0001>
module attributes {stable_mosaic.version = 11 : i64} {
  func.func @posteriori_kernel(%arg0: i32, %arg1: memref<8x128xf32, #tpu.memory_space<vmem>>, %arg2: memref<128x512xf32, #tpu.memory_space<vmem>>, %arg3: memref<1x512xf32, #tpu.memory_space<vmem>>, %arg4: memref<512x128xf32, #tpu.memory_space<vmem>>, %arg5: memref<1x128xf32, #tpu.memory_space<vmem>>, %arg6: memref<128x128xf32, #tpu.memory_space<vmem>>, %arg7: memref<1x128xf32, #tpu.memory_space<vmem>>, %arg8: memref<8x128xf32, #tpu.memory_space<vmem>>) attributes {dimension_semantics = [#tpu.dimension_semantics<parallel>], iteration_bounds = array<i64: 1>, scalar_prefetch = 0 : i64, scratch_operands = 0 : i64, tpu.core_type = #tpu.core_type<tc>, window_params = [{transform_indices = @transform_0, window_bounds = array<i64: 8, 128>}, {pipeline_mode = #tpu.pipeline_mode<synchronous>, transform_indices = @transform_1, window_bounds = array<i64: 128, 512>}, {pipeline_mode = #tpu.pipeline_mode<synchronous>, transform_indices = @transform_2, window_bounds = array<i64: 1, 512>}, {pipeline_mode = #tpu.pipeline_mode<synchronous>, transform_indices = @transform_3, window_bounds = array<i64: 512, 128>}, {pipeline_mode = #tpu.pipeline_mode<synchronous>, transform_indices = @transform_4, window_bounds = array<i64: 1, 128>}, {pipeline_mode = #tpu.pipeline_mode<synchronous>, transform_indices = @transform_5, window_bounds = array<i64: 128, 128>}, {pipeline_mode = #tpu.pipeline_mode<synchronous>, transform_indices = @transform_6, window_bounds = array<i64: 1, 128>}, {transform_indices = @transform_7, window_bounds = array<i64: 8, 128>}]} {
    %c0 = arith.constant 0 : index
    %c0_0 = arith.constant 0 : index
    %0 = vector.load %arg1[%c0, %c0_0] : memref<8x128xf32, #tpu.memory_space<vmem>>, vector<8x128xf32>
    %c0_1 = arith.constant 0 : index
    %c0_2 = arith.constant 0 : index
    %1 = vector.load %arg2[%c0_1, %c0_2] : memref<128x512xf32, #tpu.memory_space<vmem>>, vector<128x512xf32>
    %cst = arith.constant dense<0.000000e+00> : vector<8x512xf32>
    %2 = tpu.matmul %0, %1, %cst {dimension_numbers = #tpu.dot_dimension_numbers<[1], [0], [0], [1], [0, 0, 1, 1], [], []>} : vector<8x128xf32>, vector<128x512xf32>, vector<8x512xf32> -> vector<8x512xf32>
    %c0_3 = arith.constant 0 : index
    %c0_4 = arith.constant 0 : index
    %3 = vector.load %arg3[%c0_3, %c0_4] : memref<1x512xf32, #tpu.memory_space<vmem>>, vector<1x512xf32>
    %4 = vector.broadcast %3 : vector<1x512xf32> to vector<8x512xf32>
    %5 = arith.addf %2, %4 : vector<8x512xf32>
    %cst_5 = arith.constant 0.000000e+00 : f32
    %6 = vector.broadcast %cst_5 : f32 to vector<8x512xf32>
    %7 = arith.cmpf ogt, %5, %6 : vector<8x512xf32>
    %cst_6 = arith.constant 2.000000e-01 : f32
    %8 = vector.broadcast %cst_6 : f32 to vector<8x512xf32>
    %9 = arith.mulf %8, %5 : vector<8x512xf32>
    %10 = arith.select %7, %5, %9 : vector<8x512xi1>, vector<8x512xf32>
    %c0_7 = arith.constant 0 : index
    %c0_8 = arith.constant 0 : index
    %11 = vector.load %arg4[%c0_7, %c0_8] : memref<512x128xf32, #tpu.memory_space<vmem>>, vector<512x128xf32>
    %cst_9 = arith.constant dense<0.000000e+00> : vector<8x128xf32>
    %12 = tpu.matmul %10, %11, %cst_9 {dimension_numbers = #tpu.dot_dimension_numbers<[1], [0], [0], [1], [0, 0, 1, 1], [], []>} : vector<8x512xf32>, vector<512x128xf32>, vector<8x128xf32> -> vector<8x128xf32>
    %c0_10 = arith.constant 0 : index
    %c0_11 = arith.constant 0 : index
    %13 = vector.load %arg5[%c0_10, %c0_11] : memref<1x128xf32, #tpu.memory_space<vmem>>, vector<1x128xf32>
    %14 = vector.broadcast %13 : vector<1x128xf32> to vector<8x128xf32>
    %15 = arith.addf %12, %14 : vector<8x128xf32>
    %cst_12 = arith.constant 0.000000e+00 : f32
    %16 = vector.broadcast %cst_12 : f32 to vector<8x128xf32>
    %17 = arith.cmpf ogt, %15, %16 : vector<8x128xf32>
    %cst_13 = arith.constant 2.000000e-01 : f32
    %18 = vector.broadcast %cst_13 : f32 to vector<8x128xf32>
    %19 = arith.mulf %18, %15 : vector<8x128xf32>
    %20 = arith.select %17, %15, %19 : vector<8x128xi1>, vector<8x128xf32>
    %c0_14 = arith.constant 0 : index
    %c0_15 = arith.constant 0 : index
    %21 = vector.load %arg6[%c0_14, %c0_15] : memref<128x128xf32, #tpu.memory_space<vmem>>, vector<128x128xf32>
    %cst_16 = arith.constant dense<0.000000e+00> : vector<8x128xf32>
    %22 = tpu.matmul %20, %21, %cst_16 {dimension_numbers = #tpu.dot_dimension_numbers<[1], [0], [0], [1], [0, 0, 1, 1], [], []>} : vector<8x128xf32>, vector<128x128xf32>, vector<8x128xf32> -> vector<8x128xf32>
    %c0_17 = arith.constant 0 : index
    %c0_18 = arith.constant 0 : index
    %23 = vector.load %arg7[%c0_17, %c0_18] : memref<1x128xf32, #tpu.memory_space<vmem>>, vector<1x128xf32>
    %24 = vector.broadcast %23 : vector<1x128xf32> to vector<8x128xf32>
    %25 = arith.addf %22, %24 : vector<8x128xf32>
    %c0_19 = arith.constant 0 : index
    %c0_20 = arith.constant 0 : index
    %26 = vector.load %arg8[%c0_19, %c0_20] : memref<8x128xf32, #tpu.memory_space<vmem>>, vector<8x128xf32>
    tpu.vector_store %arg8[%c0_19, %c0_20], %25 {strides = array<i32>} : memref<8x128xf32, #tpu.memory_space<vmem>>, vector<8x128xf32>,
    return
  }
  func.func @transform_0(%arg0: i32) -> (i32, i32) {
    %c0_i32 = arith.constant 0 : i32
    %c0_i32_0 = arith.constant 0 : i32
    return %arg0, %c0_i32 : i32, i32
  }
  func.func @transform_1(%arg0: i32) -> (i32, i32) {
    %c0_i32 = arith.constant 0 : i32
    %c0_i32_0 = arith.constant 0 : i32
    %c0_i32_1 = arith.constant 0 : i32
    return %c0_i32, %c0_i32_0 : i32, i32
  }
  func.func @transform_2(%arg0: i32) -> (i32, i32) {
    %c0_i32 = arith.constant 0 : i32
    %c0_i32_0 = arith.constant 0 : i32
    %c0_i32_1 = arith.constant 0 : i32
    return %c0_i32, %c0_i32_0 : i32, i32
  }
  func.func @transform_3(%arg0: i32) -> (i32, i32) {
    %c0_i32 = arith.constant 0 : i32
    %c0_i32_0 = arith.constant 0 : i32
    %c0_i32_1 = arith.constant 0 : i32
    return %c0_i32, %c0_i32_0 : i32, i32
  }
  func.func @transform_4(%arg0: i32) -> (i32, i32) {
    %c0_i32 = arith.constant 0 : i32
    %c0_i32_0 = arith.constant 0 : i32
    %c0_i32_1 = arith.constant 0 : i32
    return %c0_i32, %c0_i32_0 : i32, i32
  }
  func.func @transform_5(%arg0: i32) -> (i32, i32) {
    %c0_i32 = arith.constant 0 : i32
    %c0_i32_0 = arith.constant 0 : i32
    %c0_i32_1 = arith.constant 0 : i32
    return %c0_i32, %c0_i32_0 : i32, i32
  }
  func.func @transform_6(%arg0: i32) -> (i32, i32) {
    %c0_i32 = arith.constant 0 : i32
    %c0_i32_0 = arith.constant 0 : i32
    %c0_i32_1 = arith.constant 0 : i32
    return %c0_i32, %c0_i32_0 : i32, i32
  }
  func.func @transform_7(%arg0: i32) -> (i32, i32) {
    %c0_i32 = arith.constant 0 : i32
    %c0_i32_0 = arith.constant 0 : i32
    return %arg0, %c0_i32 : i32, i32
  }
}

</mosaic_0001>

<bundles_post_ra>
// kernel: tpu_custom_call.1
= control target key start
LH: loop header
LB: loop body
LE: loop exit
PB: predicated region body
PF: predicated region fallthrough
CT: control target
= control target key end

     0   :  { %12 = vsyncpa [#allocation3], 0  ;;  %s1184_s0 = inlined_call_operand.hbm [shape: f32[8,128], index: 0, kind: input, shape index: {}]   ;;  %s1185_s1 = inlined_call_operand.hbm [shape: f32[128,512], index: 1, kind: input, shape index: {}]   ;;  %s1186_s2 = inlined_call_operand.vmem [shape: f32[1,512], index: 2, kind: input, shape index: {}]   ;;  %s1187_s3 = inlined_call_operand.hbm [shape: f32[512,128], index: 3, kind: input, shape index: {}]   ;;  %s1188_s4 = inlined_call_operand.vmem [shape: f32[1,128], index: 4, kind: input, shape index: {}]   ;;  %s1189_s5 = inlined_call_operand.hbm [shape: f32[128,128], index: 5, kind: input, shape index: {}]   ;;  %s1190_s6 = inlined_call_operand.vmem [shape: f32[1,128], index: 6, kind: input, shape index: {}]   ;;  %s1191_s7 = inlined_call_operand.hbm [shape: f32[8,128], index: 7, kind: output, shape index: {}]  }
   0x1   :  { %13 = vsyncpa [#allocation6], 0 }
   0x2   :  { %14 = vsyncpa [#allocation9], 0 }
   0x3   :  { %15 = vsyncpa [#allocation4], 0  ;;  %s1052_s24 = smov [#allocation5]   ;;  %s934_s28 = scalar_lea.hbm %s1185_s1, 8192 }
   0x4   :  { %s31_s25 = sshll.u32 %s1052_s24, 4  ;;  %p935_p0 = scmp.ne.s32.totalorder %s1185_s1, %s934_s28  ;;  %s32_s25 = int_to_ptr.vmem [resolvable:$true] %s31_s25 }
   0x5   :  { %p938_p1 = scmp.lt.u32.totalorder %s934_s28, %s1185_s1 }
   0x7   :  { %p940_p2 = pnand %p938_p1, %p935_p0 }
   0x9   :  { %943 = shalt.err (!%p940_p2)
}
   0xa   :  { %s944_s10 = scalar_lea.vmem %s32_s25, 8192  ;;  %p949_p4 = scmp.lt.s32.totalorder %s32_s25, %s32_s25 }
   0xb   :  { %p945_p3 = scmp.ne.s32.totalorder %s32_s25, %s944_s10  ;;  %p950_p5 = scmp.lt.s32.totalorder %s944_s10, %s944_s10 }
   0xd   :  { %p951_p6 = por %p950_p5, %p949_p4 }
   0xf   :  { %p952_p7 = pnand %p951_p6, %p945_p3 }
  0x11   :  { %955 = shalt.err (!%p952_p7)
}
  0x12   :  { %s1053_s11 = smov 512   ;;  %s1054_s12 = smov 32  }
  0x13   :  { %37 = dma.hbm_to_vmem [thread:$0]  %s1185_s1, 8192, %s32_s25, [#allocation6], %s1053_s11, %s1053_s11, %s1054_s12  }
  0x14   :  { %s1055_s15 = smov [#allocation2]   ;;  %s1056_s17 = smov [#allocation7]  }
  0x15   :  { %s22_s16 = sshll.u32 %s1055_s15, 4  ;;  %s45_s18 = sshll.u32 %s1056_s17, 4  ;;  %s23_s16 = int_to_ptr.vmem [resolvable:$true] %s22_s16  ;;  %s46_s18 = int_to_ptr.vmem [resolvable:$true] %s45_s18 }
  0x16   :  { %s956_s21 = scalar_lea.hbm %s1184_s0, 128 }
  0x17   :  { %p957_p8 = scmp.ne.s32.totalorder %s1184_s0, %s956_s21  ;;  %p960_p9 = scmp.lt.u32.totalorder %s956_s21, %s1184_s0 }
  0x19   :  { %p962_p10 = pnand %p960_p9, %p957_p8 }
  0x1b   :  { %965 = shalt.err (!%p962_p10)
}
  0x1c   :  { %s966_s1 = scalar_lea.vmem %s23_s16, 128  ;;  %p971_p12 = scmp.lt.s32.totalorder %s23_s16, %s23_s16 }
  0x1d   :  { %p967_p11 = scmp.ne.s32.totalorder %s23_s16, %s966_s1  ;;  %p972_p13 = scmp.lt.s32.totalorder %s966_s1, %s966_s1 }
  0x1f   :  { %p973_p0 = por %p972_p13, %p971_p12 }
  0x21   :  { %p974_p1 = pnand %p973_p0, %p967_p11 }
  0x23   :  { %977 = shalt.err (!%p974_p1)
}
  0x24   :  { %25 = dma.hbm_to_vmem [thread:$0]  %s1184_s0, 128, %s23_s16, [#allocation3]  }
  0x25   :  { %s978_s30 = scalar_lea.hbm %s1187_s3, 8192 }
  0x26   :  { %p979_p2 = scmp.ne.s32.totalorder %s1187_s3, %s978_s30  ;;  %p982_p3 = scmp.lt.u32.totalorder %s978_s30, %s1187_s3 }
  0x28   :  { %p984_p4 = pnand %p982_p3, %p979_p2 }
  0x2a   :  { %987 = shalt.err (!%p984_p4)
}
  0x2b   :  { %s988_s12 = scalar_lea.vmem %s46_s18, 8192  ;;  %p993_p6 = scmp.lt.s32.totalorder %s46_s18, %s46_s18 }
  0x2c   :  { %p989_p5 = scmp.ne.s32.totalorder %s46_s18, %s988_s12  ;;  %p994_p7 = scmp.lt.s32.totalorder %s988_s12, %s988_s12 }
  0x2e   :  { %p995_p8 = por %p994_p7, %p993_p6 }
  0x30   :  { %p996_p9 = pnand %p995_p8, %p989_p5 }
  0x32   :  { %999 = shalt.err (!%p996_p9)
}
  0x33   :  { %s1057_s0 = smov 128   ;;  %s1058_s13 = smov 8  }
  0x34   :  { %51 = dma.hbm_to_vmem [thread:$0]  %s1187_s3, 8192, %s46_s18, [#allocation6], %s1057_s0, %s1057_s0, %s1058_s13  }
  0x35   :  { %s1059_s16 = smov [#allocation8]   ;;  %s1000_s21 = scalar_lea.hbm %s1189_s5, 2048 }
  0x36   :  { %s59_s17 = sshll.u32 %s1059_s16, 4  ;;  %p1001_p10 = scmp.ne.s32.totalorder %s1189_s5, %s1000_s21  ;;  %s60_s17 = int_to_ptr.vmem [resolvable:$true] %s59_s17 }
  0x37   :  { %p1004_p11 = scmp.lt.u32.totalorder %s1000_s21, %s1189_s5 }
  0x39   :  { %p1006_p12 = pnand %p1004_p11, %p1001_p10 }
  0x3b   :  { %1009 = shalt.err (!%p1006_p12)
}
  0x3c   :  { %s1010_s1 = scalar_lea.vmem %s60_s17, 2048  ;;  %p1015_p0 = scmp.lt.s32.totalorder %s60_s17, %s60_s17 }
  0x3d   :  { %p1011_p13 = scmp.ne.s32.totalorder %s60_s17, %s1010_s1  ;;  %p1016_p1 = scmp.lt.s32.totalorder %s1010_s1, %s1010_s1 }
  0x3f   :  { %p1017_p2 = por %p1016_p1, %p1015_p0 }
  0x41   :  { %p1018_p3 = pnand %p1017_p2, %p1011_p13 }
  0x43   :  { %1021 = shalt.err (!%p1018_p3)
}
  0x44   :  { %65 = dma.hbm_to_vmem [thread:$0]  %s1189_s5, 2048, %s60_s17, [#allocation9], %s1057_s0, %s1057_s0, %s1058_s13  }
  0x45   :  { %1044 = dma.done.wait [#allocation3], 128  }
  0x46   :  { %1045 = vsyncadd [#allocation3], 4294967168 }
  0x47   :  { %1046 = dma.done.wait [#allocation6], 16384  }
  0x48   :  { %1047 = vsyncadd [#allocation6], 4294950912 }
  0x49   :  { %1048 = dma.done.wait [#allocation9], 2048  }
  0x4a   :  { %1049 = vsyncadd [#allocation9], 4294965248  ;;  %v1060_v0 = vmov 0.0   ;;  %v82_v1 = vld [vmem:[#allocation5 + $0x8] sm:$0xff]  ;;  %v84_v3 = vld [vmem:[#allocation5 + $0x18] sm:$0xff]  ;;  %vm1062_vm4 = vmmov 0  }
  0x4b   :  { %231 = vmatprep.mubr.f32.mxu0 %v1060_v0  ;;  %302 = vmatprep.mubr.f32.mxu1 %v1060_v0  ;;  %v86_v2 = vld [vmem:[#allocation5 + $0x28] sm:$0xff]  ;;  %v88_v5 = vld [vmem:[#allocation5 + $0x38] sm:$0xff]  ;;  %v81_v6 = vld [vmem:[#allocation5] sm:$0xff]  ;;  %s1063_s30 = smov [#allocation10]  }
  0x4c   :  { %v770_v4 = vpack.c.bf16 %v86_v2, %v82_v1  ;;  %v85_v7 = vld [vmem:[#allocation5 + $0x20] sm:$0xff]  ;;  %v802_v8 = vpack.c.bf16 %v88_v5, %v84_v3  ;;  %v83_v10 = vld [vmem:[#allocation5 + $0x10] sm:$0xff]  ;;  %v90_v12 = vld [vmem:[#allocation5 + $0x48] sm:$0xff]  ;;  %s635_s8 = sshll.u32 %s1063_s30, 4  ;;  %s636_s8 = int_to_ptr.vmem [resolvable:$true] %s635_s8 }
  0x4d   :  { %v772_v9 = vpack.c.bf16 %v85_v7, %v81_v6  ;;  %v87_v11 = vld [vmem:[#allocation5 + $0x30] sm:$0xff]  ;;  %v94_v14 = vld [vmem:[#allocation5 + $0x68] sm:$0xff]  ;;  %v92_v15 = vld [vmem:[#allocation5 + $0x58] sm:$0xff]  ;;  %p1027_p5 = scmp.lt.s32.totalorder %s636_s8, %s636_s8 }
  0x4e   :  { %771 = vmatprep.subr.bf16.mxu0 %v770_v4  ;;  %v804_v13 = vpack.c.bf16 %v87_v11, %v83_v10  ;;  %v96_v16 = vld [vmem:[#allocation5 + $0x78] sm:$0xff]  ;;  %803 = vmatprep.subr.bf16.mxu1 %v802_v8  ;;  %v774_v17 = vpack.c.bf16 %v94_v14, %v90_v12  ;;  %v89_v19 = vld [vmem:[#allocation5 + $0x40] sm:$0xff]  ;;  %v91_v21 = vld [vmem:[#allocation5 + $0x50] sm:$0xff] }
  0x4f   :  { %773 = vmatpush1.bf16.msra.mxu0 %v772_v9  ;;  %v806_v18 = vpack.c.bf16 %v96_v16, %v92_v15  ;;  %v93_v20 = vld [vmem:[#allocation5 + $0x60] sm:$0xff]  ;;  %v95_v23 = vld [vmem:[#allocation5 + $0x70] sm:$0xff]  ;;  %v98_v24 = vld [vmem:[#allocation5 + $0x88] sm:$0xff] }
  0x50   :  { %805 = vmatpush1.bf16.msra.mxu1 %v804_v13  ;;  %v776_v22 = vpack.c.bf16 %v93_v20, %v89_v19  ;;  %v102_v25 = vld [vmem:[#allocation5 + $0xa8] sm:$0xff]  ;;  %775 = vmatprep.subr.bf16.mxu0 %v774_v17  ;;  %v808_v26 = vpack.c.bf16 %v95_v23, %v91_v21  ;;  %v100_v28 = vld [vmem:[#allocation5 + $0x98] sm:$0xff]  ;;  %v97_v30 = vld [vmem:[#allocation5 + $0x80] sm:$0xff] }
  0x51   :  { %807 = vmatprep.subr.bf16.mxu1 %v806_v18  ;;  %v778_v27 = vpack.c.bf16 %v102_v25, %v98_v24  ;;  %v104_v29 = vld [vmem:[#allocation5 + $0xb8] sm:$0xff]  ;;  %v101_v32 = vld [vmem:[#allocation5 + $0xa0] sm:$0xff]  ;;  %v99_v33 = vld [vmem:[#allocation5 + $0x90] sm:$0xff] }
  0x52   :  { %v810_v31 = vpack.c.bf16 %v104_v29, %v100_v28  ;;  %v103_v34 = vld [vmem:[#allocation5 + $0xb0] sm:$0xff]  ;;  %v780_v35 = vpack.c.bf16 %v101_v32, %v97_v30  ;;  %v106_v36 = vld [vmem:[#allocation5 + $0xc8] sm:$0xff]  ;;  %v108_v38 = vld [vmem:[#allocation5 + $0xd8] sm:$0xff] }
  0x53   :  { %777 = vmatpush1.bf16.msra.mxu0 %v776_v22  ;;  %v110_v37 = vld [vmem:[#allocation5 + $0xe8] sm:$0xff]  ;;  %v812_v39 = vpack.c.bf16 %v103_v34, %v99_v33  ;;  %v112_v41 = vld [vmem:[#allocation5 + $0xf8] sm:$0xff]  ;;  %v105_v42 = vld [vmem:[#allocation5 + $0xc0] sm:$0xff] }
  0x54   :  { %809 = vmatpush1.bf16.msra.mxu1 %v808_v26  ;;  %779 = vmatprep.subr.bf16.mxu0 %v778_v27  ;;  %v782_v40 = vpack.c.bf16 %v110_v37, %v106_v36  ;;  %v109_v43 = vld [vmem:[#allocation5 + $0xe0] sm:$0xff]  ;;  %v814_v44 = vpack.c.bf16 %v112_v41, %v108_v38  ;;  %v107_v45 = vld [vmem:[#allocation5 + $0xd0] sm:$0xff]  ;;  %v114_v47 = vld [vmem:[#allocation5 + $0x108] sm:$0xff] }
  0x55   :  { %811 = vmatprep.subr.bf16.mxu1 %v810_v31  ;;  %v111_v46 = vld [vmem:[#allocation5 + $0xf0] sm:$0xff]  ;;  %v118_v48 = vld [vmem:[#allocation5 + $0x128] sm:$0xff]  ;;  %v116_v49 = vld [vmem:[#allocation5 + $0x118] sm:$0xff]  ;;  %v784_v51 = vpack.c.bf16 %v109_v43, %v105_v42 }
  0x56   :  { %v120_v50 = vld [vmem:[#allocation5 + $0x138] sm:$0xff]  ;;  %v816_v52 = vpack.c.bf16 %v111_v46, %v107_v45  ;;  %v786_v53 = vpack.c.bf16 %v118_v48, %v114_v47  ;;  %v113_v54 = vld [vmem:[#allocation5 + $0x100] sm:$0xff]  ;;  %v115_v56 = vld [vmem:[#allocation5 + $0x110] sm:$0xff] }
  0x57   :  { %781 = vmatpush1.bf16.msra.mxu0 %v780_v35  ;;  %v117_v55 = vld [vmem:[#allocation5 + $0x120] sm:$0xff]  ;;  %v818_v57 = vpack.c.bf16 %v120_v50, %v116_v49  ;;  %v119_v58 = vld [vmem:[#allocation5 + $0x130] sm:$0xff]  ;;  %v122_v59 = vld [vmem:[#allocation5 + $0x148] sm:$0xff] }
  0x58   :  { %813 = vmatpush1.bf16.msra.mxu1 %v812_v39  ;;  %783 = vmatprep.subr.bf16.mxu0 %v782_v40  ;;  %v126_v60 = vld [vmem:[#allocation5 + $0x168] sm:$0xff]  ;;  %v124_v61 = vld [vmem:[#allocation5 + $0x158] sm:$0xff]  ;;  %v788_v63 = vpack.c.bf16 %v117_v55, %v113_v54  ;;  %v820_v1 = vpack.c.bf16 %v119_v58, %v115_v56  ;;  %v121_v3 = vld [vmem:[#allocation5 + $0x140] sm:$0xff] }
  0x59   :  { %815 = vmatprep.subr.bf16.mxu1 %v814_v44  ;;  %v128_v62 = vld [vmem:[#allocation5 + $0x178] sm:$0xff]  ;;  %v790_v2 = vpack.c.bf16 %v126_v60, %v122_v59  ;;  %v125_v4 = vld [vmem:[#allocation5 + $0x160] sm:$0xff]  ;;  %v123_v5 = vld [vmem:[#allocation5 + $0x150] sm:$0xff] }
  0x5a   :  { %v822_v6 = vpack.c.bf16 %v128_v62, %v124_v61  ;;  %v127_v7 = vld [vmem:[#allocation5 + $0x170] sm:$0xff]  ;;  %v130_v8 = vld [vmem:[#allocation5 + $0x188] sm:$0xff]  ;;  %v132_v10 = vld [vmem:[#allocation5 + $0x198] sm:$0xff]  ;;  %v792_v12 = vpack.c.bf16 %v125_v4, %v121_v3 }
  0x5b   :  { %785 = vmatpush1.bf16.msra.mxu0 %v784_v51  ;;  %v134_v9 = vld [vmem:[#allocation5 + $0x1a8] sm:$0xff]  ;;  %v136_v11 = vld [vmem:[#allocation5 + $0x1b8] sm:$0xff]  ;;  %v824_v13 = vpack.c.bf16 %v127_v7, %v123_v5  ;;  %v129_v15 = vld [vmem:[#allocation5 + $0x180] sm:$0xff] }
  0x5c   :  { %817 = vmatpush1.bf16.msra.mxu1 %v816_v52  ;;  %787 = vmatprep.subr.bf16.mxu0 %v786_v53  ;;  %v794_v14 = vpack.c.bf16 %v134_v9, %v130_v8  ;;  %v133_v16 = vld [vmem:[#allocation5 + $0x1a0] sm:$0xff]  ;;  %v131_v17 = vld [vmem:[#allocation5 + $0x190] sm:$0xff]  ;;  %v826_v18 = vpack.c.bf16 %v136_v11, %v132_v10  ;;  %v138_v20 = vld [vmem:[#allocation5 + $0x1c8] sm:$0xff] }
  0x5d   :  { %819 = vmatprep.subr.bf16.mxu1 %v818_v57  ;;  %v135_v19 = vld [vmem:[#allocation5 + $0x1b0] sm:$0xff]  ;;  %v142_v21 = vld [vmem:[#allocation5 + $0x1e8] sm:$0xff]  ;;  %v140_v22 = vld [vmem:[#allocation5 + $0x1d8] sm:$0xff]  ;;  %v796_v24 = vpack.c.bf16 %v133_v16, %v129_v15 }
  0x5e   :  { %v144_v23 = vld [vmem:[#allocation5 + $0x1f8] sm:$0xff]  ;;  %v828_v25 = vpack.c.bf16 %v135_v19, %v131_v17  ;;  %v798_v26 = vpack.c.bf16 %v142_v21, %v138_v20  ;;  %v137_v27 = vld [vmem:[#allocation5 + $0x1c0] sm:$0xff]  ;;  %v139_v29 = vld [vmem:[#allocation5 + $0x1d0] sm:$0xff] }
  0x5f   :  { %789 = vmatpush1.bf16.msra.mxu0 %v788_v63  ;;  %v141_v28 = vld [vmem:[#allocation5 + $0x1e0] sm:$0xff]  ;;  %v830_v30 = vpack.c.bf16 %v144_v23, %v140_v22  ;;  %v143_v31 = vld [vmem:[#allocation5 + $0x1f0] sm:$0xff]  ;;  %v338_v33 = vld [vmem:[#allocation7 + $0x88] sm:$0xff] }
  0x60   :  { %821 = vmatpush1.bf16.msra.mxu1 %v820_v1  ;;  %791 = vmatprep.subr.bf16.mxu0 %v790_v2  ;;  %v337_v32 = vld [vmem:[#allocation7 + $0x80] sm:$0xff]  ;;  %v370_v35 = vld [vmem:[#allocation7 + $0x188] sm:$0xff]  ;;  %v800_v36 = vpack.c.bf16 %v141_v28, %v137_v27  ;;  %v832_v37 = vpack.c.bf16 %v143_v31, %v139_v29  ;;  %v339_v44 = vld [vmem:[#allocation7 + $0x90] sm:$0xff] }
  0x61   :  { %823 = vmatprep.subr.bf16.mxu1 %v822_v6  ;;  %v369_v34 = vld [vmem:[#allocation7 + $0x180] sm:$0xff]  ;;  %v834_v38 = vpack.c.bf16 %v338_v33, %v337_v32  ;;  %v322_v40 = vld [vmem:[#allocation7 + $0x8] sm:$0xff]  ;;  %v340_v45 = vld [vmem:[#allocation7 + $0x98] sm:$0xff] }
  0x62   :  { %v321_v39 = vld [vmem:[#allocation7] sm:$0xff]  ;;  %v866_v42 = vpack.c.bf16 %v370_v35, %v369_v34  ;;  %v354_v43 = vld [vmem:[#allocation7 + $0x108] sm:$0xff]  ;;  %v371_v46 = vld [vmem:[#allocation7 + $0x190] sm:$0xff]  ;;  %v838_v51 = vpack.c.bf16 %v340_v45, %v339_v44 }
  0x63   :  { %793 = vmatpush1.bf16.msra.mxu0 %v792_v12  ;;  %v353_v41 = vld [vmem:[#allocation7 + $0x100] sm:$0xff]  ;;  %v372_v47 = vld [vmem:[#allocation7 + $0x198] sm:$0xff]  ;;  %v836_v49 = vpack.c.bf16 %v322_v40, %v321_v39  ;;  %v323_v52 = vld [vmem:[#allocation7 + $0x10] sm:$0xff] }
  0x64   :  { %825 = vmatpush1.bf16.msra.mxu1 %v824_v13  ;;  %795 = vmatprep.subr.bf16.mxu0 %v794_v14  ;;  %v80_v48 = vld [vmem:[#allocation2] sm:$0xff]  ;;  %v868_v50 = vpack.c.bf16 %v354_v43, %v353_v41  ;;  %v355_v54 = vld [vmem:[#allocation7 + $0x110] sm:$0xff]  ;;  %v870_v55 = vpack.c.bf16 %v372_v47, %v371_v46  ;;  %v341_v57 = vld [vmem:[#allocation7 + $0xa0] sm:$0xff] }
  0x65   :  { %827 = vmatprep.subr.bf16.mxu1 %v826_v18  ;;  %v324_v53 = vld [vmem:[#allocation7 + $0x18] sm:$0xff]  ;;  %v342_v58 = vld [vmem:[#allocation7 + $0xa8] sm:$0xff]  ;;  %v373_v59 = vld [vmem:[#allocation7 + $0x1a0] sm:$0xff] }
  0x66   :  { %v356_v56 = vld [vmem:[#allocation7 + $0x118] sm:$0xff]  ;;  %v374_v60 = vld [vmem:[#allocation7 + $0x1a8] sm:$0xff]  ;;  %v840_v61 = vpack.c.bf16 %v324_v53, %v323_v52  ;;  %v842_v63 = vpack.c.bf16 %v342_v58, %v341_v57  ;;  %v325_v1 = vld [vmem:[#allocation7 + $0x20] sm:$0xff] }
  0x67   :  { %797 = vmatpush1.bf16.msra.mxu0 %v796_v24  ;;  %v872_v62 = vpack.c.bf16 %v356_v56, %v355_v54  ;;  %v326_v2 = vld [vmem:[#allocation7 + $0x28] sm:$0xff]  ;;  %v357_v3 = vld [vmem:[#allocation7 + $0x120] sm:$0xff]  ;;  %v874_v4 = vpack.c.bf16 %v374_v60, %v373_v59  ;;  %v343_v6 = vld [vmem:[#allocation7 + $0xb0] sm:$0xff] }
  0x68   :  { %829 = vmatpush1.bf16.msra.mxu1 %v828_v25  ;;  %799 = vmatprep.subr.bf16.mxu0 %v798_v26  ;;  %v358_v5 = vld [vmem:[#allocation7 + $0x128] sm:$0xff]  ;;  %v344_v7 = vld [vmem:[#allocation7 + $0xb8] sm:$0xff]  ;;  %v375_v8 = vld [vmem:[#allocation7 + $0x1b0] sm:$0xff]  ;;  %v844_v10 = vpack.c.bf16 %v326_v2, %v325_v1 }
  0x69   :  { %831 = vmatprep.subr.bf16.mxu1 %v830_v30  ;;  %v376_v9 = vld [vmem:[#allocation7 + $0x1b8] sm:$0xff]  ;;  %v876_v11 = vpack.c.bf16 %v358_v5, %v357_v3  ;;  %v846_v12 = vpack.c.bf16 %v344_v7, %v343_v6  ;;  %v327_v13 = vld [vmem:[#allocation7 + $0x30] sm:$0xff]  ;;  %v345_v18 = vld [vmem:[#allocation7 + $0xc0] sm:$0xff]  ;;  %v1061_v5 = vmov 0.0|0.0   ;;  %v147_v6 = vlaneseq }
  0x6a   :  { %v328_v14 = vld [vmem:[#allocation7 + $0x38] sm:$0xff]  ;;  %v359_v15 = vld [vmem:[#allocation7 + $0x130] sm:$0xff]  ;;  %v878_v16 = vpack.c.bf16 %v376_v9, %v375_v8  ;;  %v346_v19 = vld [vmem:[#allocation7 + $0xc8] sm:$0xff] }
  0x6b   :  { %801 = vmatpush1.bf16.msra.mxu0 %v800_v36  ;;  %v360_v17 = vld [vmem:[#allocation7 + $0x138] sm:$0xff]  ;;  %v377_v20 = vld [vmem:[#allocation7 + $0x1c0] sm:$0xff]  ;;  %v378_v21 = vld [vmem:[#allocation7 + $0x1c8] sm:$0xff]  ;;  %v848_v22 = vpack.c.bf16 %v328_v14, %v327_v13  ;;  %v850_v24 = vpack.c.bf16 %v346_v19, %v345_v18  ;;  %v148_v7 = vshrl.u32 %v147_v6, 7 }
  0x6c   :  { %833 = vmatpush1.bf16.msra.mxu1 %v832_v37  ;;  %835 = vmatprep.subr.bf16.mxu0 %v834_v38  ;;  %v880_v23 = vpack.c.bf16 %v360_v17, %v359_v15  ;;  %v329_v25 = vld [vmem:[#allocation7 + $0x40] sm:$0xff]  ;;  %v330_v26 = vld [vmem:[#allocation7 + $0x48] sm:$0xff]  ;;  %v882_v28 = vpack.c.bf16 %v378_v21, %v377_v20  ;;  %v347_v30 = vld [vmem:[#allocation7 + $0xd0] sm:$0xff] }
  0x6d   :  { %867 = vmatprep.subr.bf16.mxu1 %v866_v42  ;;  %v361_v27 = vld [vmem:[#allocation7 + $0x140] sm:$0xff]  ;;  %v362_v29 = vld [vmem:[#allocation7 + $0x148] sm:$0xff]  ;;  %v348_v31 = vld [vmem:[#allocation7 + $0xd8] sm:$0xff]  ;;  %v852_v34 = vpack.c.bf16 %v330_v26, %v329_v25  ;;  %v149_v8 = vsub.s32 0, %v148_v7 }
  0x6e   :  { %232 = vmatmul.mubr.f32.vlgmr.msra.gmra.mrb[0].mxu0 %v80_v48  ;;  %v379_v32 = vld [vmem:[#allocation7 + $0x1d0] sm:$0xff]  ;;  %v380_v33 = vld [vmem:[#allocation7 + $0x1d8] sm:$0xff]  ;;  %v884_v35 = vpack.c.bf16 %v362_v29, %v361_v27  ;;  %v854_v36 = vpack.c.bf16 %v348_v31, %v347_v30  ;;  %v349_v44 = vld [vmem:[#allocation7 + $0xe0] sm:$0xff] }
  0x6f   :  { %303 = vmatmul.mubr.f32.vlgmr.msra.gmra.mrb[0].mxu1 %v80_v48  ;;  %837 = vmatpush3.bf16.msra.mxu0 %v836_v49  ;;  %v331_v37 = vld [vmem:[#allocation7 + $0x50] sm:$0xff]  ;;  %v332_v38 = vld [vmem:[#allocation7 + $0x58] sm:$0xff]  ;;  %v886_v39 = vpack.c.bf16 %v380_v33, %v379_v32  ;;  %v350_v45 = vld [vmem:[#allocation7 + $0xe8] sm:$0xff] }
  0x70   :  { %869 = vmatpush3.bf16.msra.mxu1 %v868_v50  ;;  %839 = vmatprep.subr.bf16.mxu0 %v838_v51  ;;  %v363_v40 = vld [vmem:[#allocation7 + $0x150] sm:$0xff]  ;;  %v364_v41 = vld [vmem:[#allocation7 + $0x158] sm:$0xff]  ;;  %v856_v42 = vpack.c.bf16 %v332_v38, %v331_v37  ;;  %v381_v46 = vld [vmem:[#allocation7 + $0x1e0] sm:$0xff]  ;;  %v858_v47 = vpack.c.bf16 %v350_v45, %v349_v44 }
  0x71   :  { %871 = vmatprep.subr.bf16.mxu1 %v870_v55  ;;  %v888_v43 = vpack.c.bf16 %v364_v41, %v363_v40  ;;  %v382_v48 = vld [vmem:[#allocation7 + $0x1e8] sm:$0xff]  ;;  %v333_v49 = vld [vmem:[#allocation7 + $0x60] sm:$0xff]  ;;  %v351_v56 = vld [vmem:[#allocation7 + $0xf0] sm:$0xff] }
  0x72   :  { %v334_v50 = vld [vmem:[#allocation7 + $0x68] sm:$0xff]  ;;  %v890_v51 = vpack.c.bf16 %v382_v48, %v381_v46  ;;  %v365_v53 = vld [vmem:[#allocation7 + $0x160] sm:$0xff]  ;;  %v352_v57 = vld [vmem:[#allocation7 + $0xf8] sm:$0xff] }
  0x73   :  { %841 = vmatpush3.bf16.msra.mxu0 %v840_v61  ;;  %v860_v52 = vpack.c.bf16 %v334_v50, %v333_v49  ;;  %v366_v54 = vld [vmem:[#allocation7 + $0x168] sm:$0xff]  ;;  %v383_v58 = vld [vmem:[#allocation7 + $0x1f0] sm:$0xff]  ;;  %v862_v59 = vpack.c.bf16 %v352_v57, %v351_v56  ;;  %v384_v60 = vld [vmem:[#allocation7 + $0x1f8] sm:$0xff] }
  0x74   :  { %873 = vmatpush3.bf16.msra.mxu1 %v872_v62  ;;  %843 = vmatprep.subr.bf16.mxu0 %v842_v63  ;;  %v892_v55 = vpack.c.bf16 %v366_v54, %v365_v53  ;;  %v335_v61 = vld [vmem:[#allocation7 + $0x70] sm:$0xff]  ;;  %v336_v62 = vld [vmem:[#allocation7 + $0x78] sm:$0xff]  ;;  %v894_v63 = vpack.c.bf16 %v384_v60, %v383_v58  ;;  %v536_v25 = vld [vmem:[#allocation8 + $0x8] sm:$0xff] }
  0x75   :  { %875 = vmatprep.subr.bf16.mxu1 %v874_v4  ;;  %v864_v1 = vpack.c.bf16 %v336_v62, %v335_v61  ;;  %v367_v2 = vld [vmem:[#allocation7 + $0x170] sm:$0xff]  ;;  %v368_v3 = vld [vmem:[#allocation7 + $0x178] sm:$0xff]  ;;  %v540_v40 = vld [vmem:[#allocation8 + $0x28] sm:$0xff] }
  0x76   :  { %v896_v4 = vpack.c.bf16 %v368_v3, %v367_v2  ;;  %v145_v9 = vld [vmem:[%s1186_s2] sm:$0xf]  ;;  %v537_v33 = vld [vmem:[#allocation8 + $0x10] sm:$0xff]  ;;  %v543_v45 = vld [vmem:[#allocation8 + $0x40] sm:$0xff] }
  0x77   :  { %845 = vmatpush3.bf16.msra.mxu0 %v844_v10  ;;  %v157_v10 = vsub.s32 2, %v148_v7  ;;  %v150_v13 = vrot.slane %v145_v9, %v149_v8  ;;  %v544_v46 = vld [vmem:[#allocation8 + $0x48] sm:$0xff]  ;;  %v545_v48 = vld [vmem:[#allocation8 + $0x50] sm:$0xff]  ;;  %v546_v49 = vld [vmem:[#allocation8 + $0x58] sm:$0xff] }
  0x78   :  { %877 = vmatpush3.bf16.msra.mxu1 %v876_v11  ;;  %847 = vmatprep.subr.bf16.mxu0 %v846_v12  ;;  %v153_v11 = vsub.s32 1, %v148_v7  ;;  %v161_v12 = vsub.s32 3, %v148_v7  ;;  %v914_v50 = vpack.c.bf16 %v546_v49, %v545_v48  ;;  %v549_v54 = vld [vmem:[#allocation8 + $0x70] sm:$0xff] }
  0x79   :  { %879 = vmatprep.subr.bf16.mxu1 %v878_v16  ;;  %v158_v14 = vrot.slane %v145_v9, %v157_v10 }
  0x7a   :  { %v154_v15 = vrot.slane %v145_v9, %v153_v11  ;;  %v162_v16 = vrot.slane %v145_v9, %v161_v12 }
  0x7b   :  { %849 = vmatpush3.bf16.msra.mxu0 %v848_v22 }
  0x7c   :  { %881 = vmatpush3.bf16.msra.mxu1 %v880_v23  ;;  %851 = vmatprep.subr.bf16.mxu0 %v850_v24  ;;  %v535_v24 = vld [vmem:[#allocation8] sm:$0xff] }
  0x7d   :  { %883 = vmatprep.subr.bf16.mxu1 %v882_v28  ;;  %v899_v31 = vpack.c.bf16 %v536_v25, %v535_v24 }
  0x7f   :  { %853 = vmatpush3.bf16.msra.mxu0 %v852_v34  ;;  %v538_v34 = vld [vmem:[#allocation8 + $0x18] sm:$0xff] }
  0x80   :  { %885 = vmatpush3.bf16.msra.mxu1 %v884_v35  ;;  %855 = vmatprep.subr.bf16.mxu0 %v854_v36  ;;  %v902_v38 = vpack.c.bf16 %v538_v34, %v537_v33 }
  0x81   :  { %887 = vmatprep.subr.bf16.mxu1 %v886_v39  ;;  %v539_v39 = vld [vmem:[#allocation8 + $0x20] sm:$0xff] }
  0x82   :  { %v905_v41 = vpack.c.bf16 %v540_v40, %v539_v39 }
  0x83   :  { %857 = vmatpush3.bf16.msra.mxu0 %v856_v42  ;;  %v541_v42 = vld [vmem:[#allocation8 + $0x30] sm:$0xff] }
  0x84   :  { %889 = vmatpush3.bf16.msra.mxu1 %v888_v43  ;;  %859 = vmatprep.subr.bf16.mxu0 %v858_v47  ;;  %v542_v43 = vld [vmem:[#allocation8 + $0x38] sm:$0xff]  ;;  %v911_v47 = vpack.c.bf16 %v544_v46, %v543_v45 }
  0x85   :  { %891 = vmatprep.subr.bf16.mxu1 %v890_v51  ;;  %v908_v44 = vpack.c.bf16 %v542_v43, %v541_v42  ;;  %v547_v51 = vld [vmem:[#allocation8 + $0x60] sm:$0xff] }
  0x87   :  { %861 = vmatpush3.bf16.msra.mxu0 %v860_v52  ;;  %v548_v52 = vld [vmem:[#allocation8 + $0x68] sm:$0xff] }
  0x88   :  { %893 = vmatpush3.bf16.msra.mxu1 %v892_v55  ;;  %863 = vmatprep.subr.bf16.mxu0 %v862_v59  ;;  %v917_v53 = vpack.c.bf16 %v548_v52, %v547_v51  ;;  %v550_v55 = vld [vmem:[#allocation8 + $0x78] sm:$0xff] }
  0x89   :  { %895 = vmatprep.subr.bf16.mxu1 %v894_v63  ;;  %v920_v56 = vpack.c.bf16 %v550_v55, %v549_v54  ;;  %v646_v59 = vld [vmem:[%s1188_s4] ss:$0 sm:$0xff]  ;;  %s1022_s4 = scalar_lea.vmem %s636_s8, 128 }
  0x8a   :  { %p1023_p4 = scmp.ne.s32.totalorder %s636_s8, %s1022_s4  ;;  %p1028_p6 = scmp.lt.s32.totalorder %s1022_s4, %s1022_s4 }
  0x8b   :  { %865 = vmatpush3.bf16.msra.mxu0 %v864_v1 }
  0x8c   :  { %897 = vmatpush3.bf16.msra.mxu1 %v896_v4  ;;  %898 = vmatprep.subr.bf16.mxu0 %v1061_v5  ;;  %p1029_p7 = por %p1028_p6, %p1027_p5 }
  0x8e   :  { %p1030_p8 = pnand %p1029_p7, %p1023_p4 }
 0x141   :  { %v233_v17 = vpop.f32.mrb[0].mxu0 }
 0x142   :  { %v234_v18 = vadd.f32 %v233_v17, %v150_v13  ;;  %v304_v19 = vpop.f32.mrb[0].mxu1  ;;  %v235_v20 = vpop.f32.mrb[1].mxu0 }
 0x143   :  { %v305_v21 = vadd.f32 %v304_v19, %v158_v14  ;;  %v236_v22 = vadd.f32 %v235_v20, %v154_v15  ;;  %v306_v23 = vpop.f32.mrb[1].mxu1 }
 0x144   :  { %v313_v26 = vmul.f32 0.2, %v234_v18  ;;  %v307_v27 = vadd.f32 %v306_v23, %v162_v16  ;;  %vm309_vm0 = vcmp.gt.f32.partialorder %v234_v18, 0.0 }
 0x145   :  { %v315_v28 = vmul.f32 0.2, %v305_v21  ;;  %v314_v29 = vmul.f32 0.2, %v236_v22  ;;  %vm310_vm1 = vcmp.gt.f32.partialorder %v236_v22, 0.0  ;;  %vm311_vm2 = vcmp.gt.f32.partialorder %v305_v21, 0.0 }
 0x146   :  { %v316_v30 = vmul.f32 0.2, %v307_v27  ;;  %vm312_vm3 = vcmp.gt.f32.partialorder %v307_v27, 0.0  ;;  %v317_v36 = vsel %vm309_vm0, %v234_v18, %v313_v26 }
 0x147   :  { %v318_v32 = vsel %vm310_vm1, %v236_v22, %v314_v29  ;;  %v319_v37 = vsel %vm311_vm2, %v305_v21, %v315_v28 }
 0x148   :  { %456 = vmatprep.mubr.f32.mxu0 %v318_v32  ;;  %v320_v35 = vsel %vm312_vm3, %v307_v27, %v316_v30 }
 0x149   :  { %526 = vmatprep.mubr.f32.mxu1 %v320_v35  ;;  %457 = vmatmul.mubr.f32.vlgmr.msra.gmra.mrb[2].mxu0 %v317_v36 }
 0x14a   :  { %527 = vmatmul.mubr.f32.vlgmr.msra.gmra.mrb[2].mxu1 %v319_v37  ;;  %900 = vmatpush3.bf16.msra.mxu0 %v899_v31 }
 0x14b   :  { %901 = vmatprep.subr.bf16.mxu0 %v1061_v5  ;;  %767 = vmatprep.mubr.msk.f32.mxu0 %vm1062_vm4, %v1060_v0  ;;  %v647_v0 = vld [vmem:[%s1190_s6] ss:$0 sm:$0xff] }
 0x14e   :  { %903 = vmatpush3.bf16.msra.mxu0 %v902_v38 }
 0x14f   :  { %904 = vmatprep.subr.bf16.mxu0 %v1061_v5 }
 0x152   :  { %906 = vmatpush3.bf16.msra.mxu0 %v905_v41 }
 0x153   :  { %907 = vmatprep.subr.bf16.mxu0 %v1061_v5 }
 0x156   :  { %909 = vmatpush3.bf16.msra.mxu0 %v908_v44 }
 0x157   :  { %910 = vmatprep.subr.bf16.mxu0 %v1061_v5 }
 0x15a   :  { %912 = vmatpush3.bf16.msra.mxu0 %v911_v47 }
 0x15b   :  { %913 = vmatprep.subr.bf16.mxu0 %v1061_v5 }
 0x15e   :  { %915 = vmatpush3.bf16.msra.mxu0 %v914_v50 }
 0x15f   :  { %916 = vmatprep.subr.bf16.mxu0 %v1061_v5 }
 0x162   :  { %918 = vmatpush3.bf16.msra.mxu0 %v917_v53 }
 0x163   :  { %919 = vmatprep.subr.bf16.mxu0 %v1061_v5 }
 0x166   :  { %921 = vmatpush3.bf16.msra.mxu0 %v920_v56 }
 0x21c   :  { %v680_v57 = vpop.f32.mrb[2].mxu0 }
 0x21d   :  { %v715_v58 = vpop.f32.mrb[2].mxu1  ;;  %v681_v60 = vpop.f32.mrb[3].mxu0 }
 0x21e   :  { %v682_v61 = vadd.f32 %v681_v60, %v680_v57  ;;  %v716_v62 = vpop.f32.mrb[3].mxu1 }
 0x21f   :  { %v717_v63 = vadd.f32 %v716_v62, %v715_v58 }
 0x220   :  { %v459_v1 = vadd.f32 %v682_v61, %v646_v59 }
 0x222   :  { %v529_v2 = vadd.f32 %v717_v63, %v459_v1 }
 0x224   :  { %v533_v3 = vmul.f32 0.2, %v529_v2  ;;  %vm532_vm5 = vcmp.gt.f32.partialorder %v529_v2, 0.0 }
 0x226   :  { %v534_v4 = vsel %vm532_vm5, %v529_v2, %v533_v3 }
 0x227   :  { %768 = vmatmul.mubr.f32.vlgmr.msra.gmra.mrb[4].mxu0 %v534_v4 }
 0x2fa   :  { %v624_v5 = vpop.f32.mrb[4].mxu0 }
 0x2fb   :  { %v625_v6 = vadd.f32 %v647_v0, %v624_v5  ;;  %v769_v7 = vpop.f32.mrb[5].mxu0 }
 0x2fd   :  { %628 = vst [vmem:[#allocation10] sm:$0xff] %v625_v6 }
 0x2fe   :  { %1033 = shalt.err (!%p1030_p8)
}
 0x2ff   :  { %s1034_s11 = scalar_lea.hbm %s1191_s7, 128 }
 0x300   :  { %p1035_p9 = scmp.ne.s32.totalorder %s1191_s7, %s1034_s11  ;;  %p1038_p10 = scmp.lt.u32.totalorder %s1034_s11, %s1191_s7 }
 0x302   :  { %p1040_p11 = pnand %p1038_p10, %p1035_p9 }
 0x304   :  { %1043 = shalt.err (!%p1040_p11)
}
 0x305   :  { %638 = dma.vmem_to_hbm [thread:$0]  %s636_s8, 128, %s1191_s7, [#allocation4]  }
 0x306   :  { %1050 = dma.done.wait [#allocation4], 128  }
 0x307   :  { %1051 = vsyncadd [#allocation4], 4294967168 }
 0x308   :  { %642 = vsyncpa [#allocation3], 1 }
 0x309   :  { %643 = vsyncpa [#allocation6], 1 }
 0x30a   :  { %644 = vsyncpa [#allocation9], 1 }
 0x30b   :  { %645 = vsyncpa [#allocation4], 1 }

</bundles_post_ra>
